<compile_context>
chip_gen: v7x
topology: tpu7x:2x2x1
jax: 0.10.0
libtpu: 0.0.40
codegen_flags: <defaults>
</compile_context>

<pallas_src>
import functools

import jax
import jax.numpy as jnp
from jax.experimental import pallas as pl
from jax.experimental.pallas import tpu as pltpu


def _round_up(x, m):
    return (x + m - 1) // m * m


def _pick_tn(n, dp):
    """Row-tile size: big enough to pipeline well, small enough for scoped VMEM
    (double-buffered in+out at f32 worst case plus in-kernel f32 temps)."""
    budget = 12 * 1024 * 1024          # leave headroom under v5e's 16 MiB default / v7x's 32 MiB
    per_row = 24 * dp                  # ~ (2 bufs * (in+out) * 4B) + f32 temps, per row
    cap = max(8, (budget // per_row) // 8 * 8)
    tn = min(512, cap, _round_up(n, 8))
    return max(8, tn)


def _layernorm_kernel(x_ref, g_ref, b_ref, o_ref, *, eps, d_true):
    # x_ref: (TN, Dp). Single-pass stats: var = E[x^2] - mean^2 (divide by true D;
    # padded lanes are zero so the sums are unaffected).
    x = x_ref[...].astype(jnp.float32)
    s = jnp.sum(x, axis=-1, keepdims=True)
    sq = jnp.sum(x * x, axis=-1, keepdims=True)
    mean = s / d_true
    var = jnp.maximum(sq / d_true - mean * mean, 0.0)
    inv = jax.lax.rsqrt(var + eps)
    g = g_ref[...].astype(jnp.float32)
    b = b_ref[...].astype(jnp.float32)
    o_ref[...] = ((x - mean) * inv * g + b).astype(o_ref.dtype)


def _bn_stats_kernel(x_ref, g_ref, b_ref, ss_ref, sum_ref, sq_ref, *, eps, n_true):
    # Pass 1: accumulate per-channel sum / sum-of-squares across row tiles
    # ('arbitrary' grid axis, resident (2, Dp) output). Finalize folds the affine:
    #   scale = gamma * rsqrt(var + eps) ; shift = beta - mean * scale
    i = pl.program_id(0)

    @pl.when(i == 0)
    def _():
        sum_ref[...] = jnp.zeros_like(sum_ref)
        sq_ref[...] = jnp.zeros_like(sq_ref)

    x = x_ref[...].astype(jnp.float32)
    sum_ref[...] += jnp.sum(x, axis=0, keepdims=True)
    sq_ref[...] += jnp.sum(x * x, axis=0, keepdims=True)

    @pl.when(i == pl.num_programs(0) - 1)
    def _():
        mean = sum_ref[...] / n_true            # padded rows are zero; divide by true N
        var = jnp.maximum(sq_ref[...] / n_true - mean * mean, 0.0)
        scale = g_ref[...].astype(jnp.float32) * jax.lax.rsqrt(var + eps)
        shift = b_ref[...].astype(jnp.float32) - mean * scale
        ss_ref[...] = jnp.concatenate([scale, shift], axis=0)


def _bn_apply_kernel(ss_ref, x_ref, o_ref):
    # Pass 2: streaming apply with folded affine (one mul + one add per element).
    x = x_ref[...].astype(jnp.float32)
    scale = ss_ref[0:1, :]
    shift = ss_ref[1:2, :]
    o_ref[...] = (x * scale + shift).astype(o_ref.dtype)


def normalization_forward(x, method, gamma=None, beta=None, eps=1e-5):
    """Pallas implementation of Normalization.forward for x of shape (B, T, D)."""
    assert method in ("layer", "batch", "none")
    if method == "none":
        return x

    B, T, D = x.shape
    N = B * T
    Dp = _round_up(max(D, 128), 128)    # lane-dense blocks / stores
    TN = _pick_tn(N, Dp)
    Np = _round_up(N, TN)
    n_tiles = Np // TN

    xf = x.reshape(N, D)
    if (Np, Dp) != (N, D):
        xf = jnp.pad(xf, ((0, Np - N), (0, Dp - D)))
    g = gamma.astype(jnp.float32).reshape(1, D)
    b = beta.astype(jnp.float32).reshape(1, D)
    if Dp != D:
        g = jnp.pad(g, ((0, 0), (0, Dp - D)))
        b = jnp.pad(b, ((0, 0), (0, Dp - D)))

    vmem_limit = 32 * 1024 * 1024

    if method == "layer":
        out = pl.pallas_call(
            functools.partial(_layernorm_kernel, eps=eps, d_true=float(D)),
            out_shape=jax.ShapeDtypeStruct((Np, Dp), x.dtype),
            grid=(n_tiles,),
            in_specs=[
                pl.BlockSpec((TN, Dp), lambda i: (i, 0)),
                pl.BlockSpec((1, Dp), lambda i: (0, 0)),
                pl.BlockSpec((1, Dp), lambda i: (0, 0)),
            ],
            out_specs=pl.BlockSpec((TN, Dp), lambda i: (i, 0)),
            compiler_params=pltpu.CompilerParams(
                dimension_semantics=("parallel",),
                vmem_limit_bytes=vmem_limit,
            ),
        )(xf, g, b)
    else:  # batch
        scale_shift = pl.pallas_call(
            functools.partial(_bn_stats_kernel, eps=eps, n_true=float(N)),
            out_shape=jax.ShapeDtypeStruct((2, Dp), jnp.float32),
            grid=(n_tiles,),
            in_specs=[
                pl.BlockSpec((TN, Dp), lambda i: (i, 0)),
                pl.BlockSpec((1, Dp), lambda i: (0, 0)),
                pl.BlockSpec((1, Dp), lambda i: (0, 0)),
            ],
            out_specs=pl.BlockSpec((2, Dp), lambda i: (0, 0)),
            scratch_shapes=[
                pltpu.VMEM((1, Dp), jnp.float32),
                pltpu.VMEM((1, Dp), jnp.float32),
            ],
            compiler_params=pltpu.CompilerParams(
                dimension_semantics=("arbitrary",),
                vmem_limit_bytes=vmem_limit,
            ),
        )(xf, g, b)

        out = pl.pallas_call(
            _bn_apply_kernel,
            out_shape=jax.ShapeDtypeStruct((Np, Dp), x.dtype),
            grid=(n_tiles,),
            in_specs=[
                pl.BlockSpec((2, Dp), lambda i: (0, 0)),
                pl.BlockSpec((TN, Dp), lambda i: (i, 0)),
            ],
            out_specs=pl.BlockSpec((TN, Dp), lambda i: (i, 0)),
            compiler_params=pltpu.CompilerParams(
                dimension_semantics=("parallel",),
                vmem_limit_bytes=vmem_limit,
            ),
        )(scale_shift, xf)

    if (Np, Dp) != (N, D):
        out = out[:N, :D]
    return out.reshape(B, T, D)


class Normalization:
    """Mirror of the PyTorch module. Parameters follow PyTorch defaults:
    weight (gamma) = ones(d_model), bias (beta) = zeros(d_model)."""

    def __init__(self, method, d_model):
        assert method in ("layer", "batch", "none")
        self.method = method
        self.d_model = d_model
        if method in ("layer", "batch"):
            self.gamma = jnp.ones((d_model,), dtype=jnp.float32)
            self.beta = jnp.zeros((d_model,), dtype=jnp.float32)
        else:
            self.gamma = None
            self.beta = None
        # TODO(synk): BatchNorm1d running_mean/running_var momentum update is training
        # bookkeeping (not part of forward compute); omitted here.

    def __call__(self, x):
        return normalization_forward(x, self.method, self.gamma, self.beta)


def _reference(x, method, gamma, beta, eps=1e-5):
    # pure-JAX reference for sanity checking
    if method == "none":
        return x
    xf = x.astype(jnp.float32)
    if method == "layer":
        mean = jnp.mean(xf, axis=-1, keepdims=True)
        var = jnp.mean((xf - mean) ** 2, axis=-1, keepdims=True)
    else:  # batch: stats over (B, T) per channel, biased variance (training mode)
        mean = jnp.mean(xf, axis=(0, 1), keepdims=True)
        var = jnp.mean((xf - mean) ** 2, axis=(0, 1), keepdims=True)
    y = (xf - mean) * jax.lax.rsqrt(var + eps) * gamma + beta
    return y.astype(x.dtype)


if __name__ == "__main__":
    key = jax.random.PRNGKey(0)
    B, T, D = 2, 8, 32
    x = jax.random.normal(key, (B, T, D), dtype=jnp.float32)

    ok = True
    for method in ("layer", "batch", "none"):
        mod = Normalization(method, D)
        y = mod(x)
        y = jax.block_until_ready(y)
        y_ref = _reference(x, method, mod.gamma, mod.beta)
        if y.shape != (B, T, D):
            ok = False
        if not jnp.allclose(y, y_ref, atol=1e-4, rtol=1e-4):
            ok = False

    if ok:
        print("KERNEL_OK")
</pallas_src>

<mosaic_0001>
module attributes {stable_mosaic.version = 11 : i64} {
  func.func @_layernorm_kernel(%arg0: i32, %arg1: memref<16x128xf32, #tpu.memory_space<vmem>>, %arg2: memref<1x128xf32, #tpu.memory_space<vmem>>, %arg3: memref<1x128xf32, #tpu.memory_space<vmem>>, %arg4: memref<16x128xf32, #tpu.memory_space<vmem>>) attributes {dimension_semantics = [#tpu.dimension_semantics<parallel>], iteration_bounds = array<i64: 1>, scalar_prefetch = 0 : i64, scratch_operands = 0 : i64, tpu.core_type = #tpu.core_type<tc>, window_params = [{transform_indices = @transform_0, window_bounds = array<i64: 16, 128>}, {pipeline_mode = #tpu.pipeline_mode<synchronous>, transform_indices = @transform_1, window_bounds = array<i64: 1, 128>}, {pipeline_mode = #tpu.pipeline_mode<synchronous>, transform_indices = @transform_2, window_bounds = array<i64: 1, 128>}, {transform_indices = @transform_3, window_bounds = array<i64: 16, 128>}]} {
    %c0 = arith.constant 0 : index
    %c0_0 = arith.constant 0 : index
    %0 = vector.load %arg1[%c0, %c0_0] : memref<16x128xf32, #tpu.memory_space<vmem>>, vector<16x128xf32>
    %cst = arith.constant dense<0.000000e+00> : vector<16xf32>
    %1 = vector.multi_reduction <add>, %0, %cst [1] : vector<16x128xf32> to vector<16xf32>
    %2 = vector.shape_cast %1 : vector<16xf32> to vector<16x1xf32>
    %3 = arith.mulf %0, %0 : vector<16x128xf32>
    %cst_1 = arith.constant dense<0.000000e+00> : vector<16xf32>
    %4 = vector.multi_reduction <add>, %3, %cst_1 [1] : vector<16x128xf32> to vector<16xf32>
    %5 = vector.shape_cast %4 : vector<16xf32> to vector<16x1xf32>
    %cst_2 = arith.constant 3.200000e+01 : f32
    %6 = vector.broadcast %cst_2 : f32 to vector<16x1xf32>
    %7 = arith.divf %2, %6 : vector<16x1xf32>
    %cst_3 = arith.constant 3.200000e+01 : f32
    %8 = vector.broadcast %cst_3 : f32 to vector<16x1xf32>
    %9 = arith.divf %5, %8 : vector<16x1xf32>
    %10 = arith.mulf %7, %7 : vector<16x1xf32>
    %11 = arith.subf %9, %10 : vector<16x1xf32>
    %cst_4 = arith.constant 0.000000e+00 : f32
    %12 = vector.broadcast %cst_4 : f32 to vector<16x1xf32>
    %13 = arith.maximumf %11, %12 : vector<16x1xf32>
    %cst_5 = arith.constant 9.99999974E-6 : f32
    %14 = vector.broadcast %cst_5 : f32 to vector<16x1xf32>
    %15 = arith.addf %13, %14 : vector<16x1xf32>
    %16 = math.rsqrt %15 : vector<16x1xf32>
    %c0_6 = arith.constant 0 : index
    %c0_7 = arith.constant 0 : index
    %17 = vector.load %arg2[%c0_6, %c0_7] : memref<1x128xf32, #tpu.memory_space<vmem>>, vector<1x128xf32>
    %c0_8 = arith.constant 0 : index
    %c0_9 = arith.constant 0 : index
    %18 = vector.load %arg3[%c0_8, %c0_9] : memref<1x128xf32, #tpu.memory_space<vmem>>, vector<1x128xf32>
    %19 = vector.broadcast %7 : vector<16x1xf32> to vector<16x128xf32>
    %20 = arith.subf %0, %19 : vector<16x128xf32>
    %21 = vector.broadcast %16 : vector<16x1xf32> to vector<16x128xf32>
    %22 = arith.mulf %20, %21 : vector<16x128xf32>
    %23 = vector.broadcast %17 : vector<1x128xf32> to vector<16x128xf32>
    %24 = arith.mulf %22, %23 : vector<16x128xf32>
    %25 = vector.broadcast %18 : vector<1x128xf32> to vector<16x128xf32>
    %26 = arith.addf %24, %25 : vector<16x128xf32>
    %c0_10 = arith.constant 0 : index
    %c0_11 = arith.constant 0 : index
    %27 = vector.load %arg4[%c0_10, %c0_11] : memref<16x128xf32, #tpu.memory_space<vmem>>, vector<16x128xf32>
    tpu.vector_store %arg4[%c0_10, %c0_11], %26 {strides = array<i32>} : memref<16x128xf32, #tpu.memory_space<vmem>>, vector<16x128xf32>,
    return
  }
  func.func @transform_0(%arg0: i32) -> (i32, i32) {
    %c0_i32 = arith.constant 0 : i32
    %c0_i32_0 = arith.constant 0 : i32
    return %arg0, %c0_i32 : i32, i32
  }
  func.func @transform_1(%arg0: i32) -> (i32, i32) {
    %c0_i32 = arith.constant 0 : i32
    %c0_i32_0 = arith.constant 0 : i32
    %c0_i32_1 = arith.constant 0 : i32
    return %c0_i32, %c0_i32_0 : i32, i32
  }
  func.func @transform_2(%arg0: i32) -> (i32, i32) {
    %c0_i32 = arith.constant 0 : i32
    %c0_i32_0 = arith.constant 0 : i32
    %c0_i32_1 = arith.constant 0 : i32
    return %c0_i32, %c0_i32_0 : i32, i32
  }
  func.func @transform_3(%arg0: i32) -> (i32, i32) {
    %c0_i32 = arith.constant 0 : i32
    %c0_i32_0 = arith.constant 0 : i32
    return %arg0, %c0_i32 : i32, i32
  }
}

</mosaic_0001>

<bundles_post_ra>
// kernel: tpu_custom_call.1
= control target key start
LH: loop header
LB: loop body
LE: loop exit
PB: predicated region body
PF: predicated region fallthrough
CT: control target
= control target key end

     0   :  { %8 = vsyncpa [#allocation3], 0  ;;  %s215_s0 = inlined_call_operand.hbm [shape: f32[16,128], index: 0, kind: input, shape index: {}]   ;;  %s216_s1 = inlined_call_operand.vmem [shape: f32[1,128], index: 1, kind: input, shape index: {}]   ;;  %s217_s2 = inlined_call_operand.vmem [shape: f32[1,128], index: 2, kind: input, shape index: {}]   ;;  %s218_s3 = inlined_call_operand.hbm [shape: f32[16,128], index: 3, kind: output, shape index: {}]  }
   0x1   :  { %9 = vsyncpa [#allocation4], 0  ;;  %s155_s12 = smov [#allocation2]   ;;  %s107_s16 = scalar_lea.hbm %s215_s0, 256 }
   0x2   :  { %s15_s13 = sshll.u32 %s155_s12, 4  ;;  %p108_p0 = scmp.ne.s32.totalorder %s215_s0, %s107_s16  ;;  %s16_s13 = int_to_ptr.vmem [resolvable:$true] %s15_s13 }
   0x3   :  { %p111_p1 = scmp.lt.u32.totalorder %s107_s16, %s215_s0 }
   0x5   :  { %p113_p2 = pnand %p111_p1, %p108_p0 }
   0x7   :  { %116 = shalt.err (!%p113_p2)
}
   0x8   :  { %s117_s21 = scalar_lea.vmem %s16_s13, 256  ;;  %p122_p4 = scmp.lt.s32.totalorder %s16_s13, %s16_s13 }
   0x9   :  { %p118_p3 = scmp.ne.s32.totalorder %s16_s13, %s117_s21  ;;  %p123_p5 = scmp.lt.s32.totalorder %s117_s21, %s117_s21 }
   0xb   :  { %p124_p6 = por %p123_p5, %p122_p4 }
   0xd   :  { %p125_p7 = pnand %p124_p6, %p118_p3 }
   0xf   :  { %128 = shalt.err (!%p125_p7)
}
  0x10   :  { %s156_s22 = smov 128   ;;  %s157_s23 = smov 8  }
  0x11   :  { %21 = dma.hbm_to_vmem [thread:$0]  %s215_s0, 256, %s16_s13, [#allocation3], %s156_s22, %s156_s22, %s157_s23  }
  0x12   :  { %151 = dma.done.wait [#allocation3], 256  }
  0x13   :  { %152 = vsyncadd [#allocation3], 4294967040  ;;  %v29_v0 = vld [vmem:[#allocation2] sm:$0xff]  ;;  %v30_v1 = vld [vmem:[#allocation2 + $0x8] sm:$0xff]  ;;  %s158_s29 = smov [#allocation5]  }
  0x14   :  { %31 = vadd.xlane.f32.xlu0 %v29_v0  ;;  %v35_v2 = vmul.f32 %v29_v0, %v29_v0  ;;  %v36_v3 = vmul.f32 %v30_v1, %v30_v1  ;;  %v97_v22 = vld [vmem:[%s216_s1] ss:$0 sm:$0xff]  ;;  %s85_s30 = sshll.u32 %s158_s29, 4  ;;  %s86_s30 = int_to_ptr.vmem [resolvable:$true] %s85_s30 }
  0x15   :  { %v98_v24 = vld [vmem:[%s217_s2] ss:$0 sm:$0xff]  ;;  %s129_s4 = scalar_lea.vmem %s86_s30, 256  ;;  %p134_p9 = scmp.lt.s32.totalorder %s86_s30, %s86_s30 }
  0x16   :  { %37 = vadd.xlane.f32.xlu1 %v35_v2  ;;  %p130_p8 = scmp.ne.s32.totalorder %s86_s30, %s129_s4  ;;  %p135_p10 = scmp.lt.s32.totalorder %s129_s4, %s129_s4 }
  0x18   :  { %33 = vadd.xlane.f32.xlu0 %v30_v1  ;;  %p136_p11 = por %p135_p10, %p134_p9 }
  0x1a   :  { %39 = vadd.xlane.f32.xlu1 %v36_v3  ;;  %p137_p12 = pnand %p136_p11, %p130_p8 }
  0xa1   :  { %v32_v4 = vpop.xlane.xlu0 %31 }
  0xa2   :  { %v42_v5 = vmul.f32 0.03125, %v32_v4 }
  0xa3   :  { %v38_v6 = vpop.xlane.xlu1 %37 }
  0xa4   :  { %v46_v7 = vmul.f32 %v42_v5, %v42_v5  ;;  %v44_v8 = vmul.f32 0.03125, %v38_v6  ;;  %v58_v20 = vsub.f32 %v29_v0, %v42_v5 }
  0xa5   :  { %v34_v9 = vpop.xlane.xlu0 %33 }
  0xa6   :  { %v48_v10 = vsub.f32 %v44_v8, %v46_v7  ;;  %v43_v11 = vmul.f32 0.03125, %v34_v9 }
  0xa7   :  { %v40_v12 = vpop.xlane.xlu1 %39 }
  0xa8   :  { %v50_v13 = vmax.f32 %v48_v10, 0.0  ;;  %v47_v14 = vmul.f32 %v43_v11, %v43_v11  ;;  %v45_v15 = vmul.f32 0.03125, %v40_v12  ;;  %v59_v25 = vsub.f32 %v30_v1, %v43_v11 }
  0xaa   :  { %v52_v16 = vadd.f32 1e-05, %v50_v13  ;;  %v49_v17 = vsub.f32 %v45_v15, %v47_v14 }
  0xac   :  { %103 = vrsqrt.f32 %v52_v16  ;;  %v51_v18 = vmax.f32 %v49_v17, 0.0 }
  0xae   :  { %v53_v19 = vadd.f32 1e-05, %v51_v18 }
  0xb0   :  { %105 = vrsqrt.f32 %v53_v19 }
  0xb6   :  { %v104_v21 = vpop.eup %103 }
  0xb7   :  { %v60_v23 = vmul.f32 %v104_v21, %v58_v20 }
  0xb9   :  { %v68_v26 = vmul.f32 %v97_v22, %v60_v23 }
  0xba   :  { %v106_v27 = vpop.eup %105 }
  0xbb   :  { %v61_v28 = vmul.f32 %v106_v27, %v59_v25  ;;  %v76_v29 = vadd.f32 %v98_v24, %v68_v26 }
  0xbd   :  { %v69_v30 = vmul.f32 %v97_v22, %v61_v28  ;;  %78 = vst [vmem:[#allocation5] sm:$0xff] %v76_v29 }
  0xbf   :  { %v77_v31 = vadd.f32 %v98_v24, %v69_v30 }
  0xc1   :  { %79 = vst [vmem:[#allocation5 + $0x8] sm:$0xff] %v77_v31 }
  0xc2   :  { %140 = shalt.err (!%p137_p12)
}
  0xc3   :  { %s141_s5 = scalar_lea.hbm %s218_s3, 256 }
  0xc4   :  { %p142_p13 = scmp.ne.s32.totalorder %s218_s3, %s141_s5  ;;  %p145_p0 = scmp.lt.u32.totalorder %s141_s5, %s218_s3 }
  0xc6   :  { %p147_p1 = pnand %p145_p0, %p142_p13 }
  0xc8   :  { %150 = shalt.err (!%p147_p1)
}
  0xc9   :  { %91 = dma.vmem_to_hbm [thread:$0]  %s86_s30, 256, %s218_s3, [#allocation4], %s156_s22, %s156_s22, %s157_s23  }
  0xca   :  { %153 = dma.done.wait [#allocation4], 256  }
  0xcb   :  { %154 = vsyncadd [#allocation4], 4294967040 }
  0xcc   :  { %95 = vsyncpa [#allocation3], 1 }
  0xcd   :  { %96 = vsyncpa [#allocation4], 1 }

</bundles_post_ra>
